<compile_context>
chip_gen: v6e
topology: v6e:2x2x1
jax: 0.10.0
libtpu: 0.0.40
codegen_flags: <defaults>
</compile_context>

<pallas_src>
import jax
import jax.numpy as jnp
from jax.experimental import pallas as pl
from jax.experimental.pallas import tpu as pltpu


def _bce_mean_kernel(score_ref, label_ref, out_ref):
    """BCE with torch.nn.BCELoss semantics (log terms clamped at -100) + mean.

    score_ref: (2, B) VMEM  row 0 -> normal-video scores, row 1 -> anomaly
    label_ref: (2, B) VMEM  row 0 -> nlabel,              row 1 -> alabel
    out_ref  : (1,)   SMEM  scalar mean loss
    """
    p = score_ref[...].astype(jnp.float32)     # (2, B)
    y = label_ref[...].astype(jnp.float32)     # (2, B)

    log_p = jnp.maximum(jnp.log(p), -100.0)
    log_1mp = jnp.maximum(jnp.log1p(-p), -100.0)   # stable for p -> 1
    per_elem = -(y * log_p + (1.0 - y) * log_1mp)  # (2, B)

    total = jnp.sum(per_elem)                       # single XLU reduce
    n_elems = score_ref.shape[0] * score_ref.shape[1]  # static python int
    out_ref[0] = total * (1.0 / n_elems)            # mean via precomputed 1/N


@jax.jit
def video_classification_loss(video_score, nlabel, alabel):
    """JAX/Pallas equivalent of VideoClassificationLoss.forward.

    video_score: (2B, 1) or (2B,) probabilities in (0, 1); first B entries
                 must be the normal-video scores, last B the anomaly scores
                 (matching torch.cat((nlabel, alabel), 0)).
    nlabel:      (B,) labels for normal videos
    alabel:      (B,) labels for anomalous videos
    returns:     scalar f32 loss (mean BCE over the concatenated labels)
    """
    B = nlabel.shape[0]
    assert alabel.shape[0] == B, "nlabel/alabel must have the same length"

    # Stack labels into one (2, B) tensor -> one DMA instead of two.
    # No dtype cast here: keep producer dtype (e.g. bf16), cast in-kernel.
    label2d = jnp.stack(
        (nlabel.reshape(-1), alabel.reshape(-1)), axis=0
    )  # (2, B)

    # Shape-safe equivalent of torch .squeeze() for a (2B, 1) tensor, then
    # view as (2, B): first B scores (normal) -> row 0, last B -> row 1.
    score2d = video_score.reshape(-1).reshape(2, B)

    out = pl.pallas_call(
        _bce_mean_kernel,
        out_shape=jax.ShapeDtypeStruct((1,), jnp.float32),
        in_specs=[
            pl.BlockSpec(memory_space=pltpu.VMEM),   # scores (2, B)
            pl.BlockSpec(memory_space=pltpu.VMEM),   # labels (2, B)
        ],
        out_specs=pl.BlockSpec(memory_space=pltpu.SMEM),
    )(score2d, label2d)

    return out[0]


if __name__ == "__main__":
    key = jax.random.PRNGKey(0)
    k1, _, _ = jax.random.split(key, 3)

    B = 8  # videos per group (normal / anomalous)

    # video_score: probabilities in (0,1), shape (2B, 1) like a model head output
    video_score = jax.nn.sigmoid(jax.random.normal(k1, (2 * B, 1), dtype=jnp.float32))
    # normal videos labeled 0, anomalous labeled 1 (typical MIL setup)
    nlabel = jnp.zeros((B,), dtype=jnp.float32)
    alabel = jnp.ones((B,), dtype=jnp.float32)

    loss = video_classification_loss(video_score, nlabel, alabel)
    jax.block_until_ready(loss)

    # reference in plain JAX (same -100 clamp semantics as torch.nn.BCELoss)
    x = video_score.reshape(-1)
    y = jnp.concatenate((nlabel, alabel), 0)
    ref = jnp.mean(-(y * jnp.maximum(jnp.log(x), -100.0)
                     + (1.0 - y) * jnp.maximum(jnp.log1p(-x), -100.0)))
    assert jnp.allclose(loss, ref, atol=1e-6), (loss, ref)

    # also check with bf16 inputs (wrapper no longer force-casts to f32)
    loss_bf16 = video_classification_loss(
        video_score.astype(jnp.bfloat16), nlabel.astype(jnp.bfloat16),
        alabel.astype(jnp.bfloat16))
    jax.block_until_ready(loss_bf16)
    assert jnp.allclose(loss_bf16, ref, atol=1e-2), (loss_bf16, ref)

    print("KERNEL_OK")
</pallas_src>

<mosaic_0001>
module attributes {stable_mosaic.version = 11 : i64} {
  func.func @_bce_mean_kernel(%arg0: memref<2x8xf32, #tpu.memory_space<vmem>>, %arg1: memref<2x8xf32, #tpu.memory_space<vmem>>, %arg2: memref<1xf32, #tpu.memory_space<smem>>) attributes {dimension_semantics = [], scalar_prefetch = 0 : i64, scratch_operands = 0 : i64, tpu.core_type = #tpu.core_type<tc>} {
    %c0 = arith.constant 0 : index
    %c0_0 = arith.constant 0 : index
    %0 = vector.load %arg0[%c0, %c0_0] : memref<2x8xf32, #tpu.memory_space<vmem>>, vector<2x8xf32>
    %c0_1 = arith.constant 0 : index
    %c0_2 = arith.constant 0 : index
    %1 = vector.load %arg1[%c0_1, %c0_2] : memref<2x8xf32, #tpu.memory_space<vmem>>, vector<2x8xf32>
    %2 = math.log %0 : vector<2x8xf32>
    %cst = arith.constant -1.000000e+02 : f32
    %3 = vector.broadcast %cst : f32 to vector<2x8xf32>
    %4 = arith.maximumf %2, %3 : vector<2x8xf32>
    %cst_3 = arith.constant 0.000000e+00 : f32
    %5 = vector.broadcast %cst_3 : f32 to vector<2x8xf32>
    %6 = arith.subf %5, %0 : vector<2x8xf32>
    %7 = math.log1p %6 : vector<2x8xf32>
    %cst_4 = arith.constant -1.000000e+02 : f32
    %8 = vector.broadcast %cst_4 : f32 to vector<2x8xf32>
    %9 = arith.maximumf %7, %8 : vector<2x8xf32>
    %10 = arith.mulf %1, %4 : vector<2x8xf32>
    %cst_5 = arith.constant 1.000000e+00 : f32
    %11 = vector.broadcast %cst_5 : f32 to vector<2x8xf32>
    %12 = arith.subf %11, %1 : vector<2x8xf32>
    %13 = arith.mulf %12, %9 : vector<2x8xf32>
    %14 = arith.addf %10, %13 : vector<2x8xf32>
    %cst_6 = arith.constant 0.000000e+00 : f32
    %15 = vector.broadcast %cst_6 : f32 to vector<2x8xf32>
    %16 = arith.subf %15, %14 : vector<2x8xf32>
    %17 = vector.shape_cast %16 : vector<2x8xf32> to vector<1x2x8xf32>
    %cst_7 = arith.constant dense<0.000000e+00> : vector<1xf32>
    %18 = vector.multi_reduction <add>, %17, %cst_7 [1, 2] : vector<1x2x8xf32> to vector<1xf32>
    %19 = vector.shape_cast %18 : vector<1xf32> to vector<1x1x1xf32>
    %20 = vector.extract %19[0, 0, 0] : f32 from vector<1x1x1xf32>
    %cst_8 = arith.constant 6.250000e-02 : f32
    %21 = arith.mulf %20, %cst_8 : f32
    %c0_9 = arith.constant 0 : index
    %22 = memref.load %arg2[%c0_9] : memref<1xf32, #tpu.memory_space<smem>>
    memref.store %21, %arg2[%c0_9] : memref<1xf32, #tpu.memory_space<smem>>
    return
  }
}

</mosaic_0001>

<bundles_post_ra>
// kernel: video_classification_loss.1
= control target key start
LH: loop header
LB: loop body
LE: loop exit
PB: predicated region body
PF: predicated region fallthrough
CT: control target
= control target key end

     0   :  { %s102_s0 = inlined_call_operand.vmem [shape: f32[2,8], index: 0, kind: input, shape index: {}]   ;;  %s103_s1 = inlined_call_operand.vmem [shape: f32[2,8], index: 1, kind: input, shape index: {}]   ;;  %s104_s2 = inlined_call_operand.hbm [shape: f32[1], index: 2, kind: output, shape index: {}]  }
   0x1   :  { %v12_v0 = vld [vmem:[%s102_s0] sm:$0x3] }
   0x2   :  { %63 = vlog2.f32 %v12_v0  ;;  %v17_v1 = vsub.f32 0.0, %v12_v0 }
   0x3   :  { %7 = vsyncpa [#allocation3], 0  ;;  %v13_v8 = vld [vmem:[%s103_s1] sm:$0x3]  ;;  %vm33_vm1 = vcmask 58368   ;;  %s77_s13 = smov [#allocation2]  }
   0x4   :  { %v18_v2 = vadd.f32 1.0, %v17_v1  ;;  %v21_v3 = vmul.f32 -0.5, %v17_v1  ;;  %v24_v6 = vand.u32 2147483647, %v17_v1  ;;  %v29_v13 = vsub.f32 1.0, %v13_v8 }
   0x6   :  { %65 = vlog2.f32 %v18_v2  ;;  %v22_v4 = vadd.f32 1.0, %v21_v3  ;;  %vm25_vm0 = vcmp.lt.f32.partialorder %v24_v6, 0.0004427343 }
   0x8   :  { %v23_v9 = vmul.f32 %v22_v4, %v17_v1 }
   0xf   :  { %v64_v5 = vpop.eup %63 }
  0x10   :  { %v15_v7 = vmul.f32 0.6931472, %v64_v5 }
  0x12   :  { %v16_v11 = vmax.f32 %v15_v7, -100.0 }
  0x13   :  { %v66_v10 = vpop.eup %65 }
  0x14   :  { %v20_v12 = vmul.f32 0.6931472, %v66_v10  ;;  %v28_v16 = vmul.f32 %v16_v11, %v13_v8 }
  0x16   :  { %v26_v14 = vsel %vm25_vm0, %v23_v9, %v20_v12 }
  0x17   :  { %v27_v15 = vmax.f32 %v26_v14, -100.0 }
  0x19   :  { %v30_v17 = vmul.f32 %v29_v13, %v27_v15 }
  0x1b   :  { %v31_v18 = vadd.f32 %v30_v17, %v28_v16 }
  0x1d   :  { %v32_v19 = vsub.f32 0.0, %v31_v18 }
  0x1f   :  { %v34_v20 = vsel %vm33_vm1, %v32_v19, 0.0 }
  0x20   :  { %35 = vadd.xlane.f32.xlu0 %v34_v20 }
  0xa9   :  { %v36_v21 = vpop.xlane.xlu0 %35 }
  0xaa   :  { %v37_v22 = vrot.slane %v36_v21, 4 }
  0xac   :  { %v38_v23 = vadd.f32 %v37_v22, %v36_v21 }
  0xae   :  { %v39_v24 = vrot.slane %v38_v23, 2 }
  0xb0   :  { %v40_v25 = vadd.f32 %v39_v24, %v38_v23 }
  0xb2   :  { %v41_v26 = vrot.slane %v40_v25, 1 }
  0xb4   :  { %v42_v27 = vadd.f32 %v41_v26, %v40_v25 }
  0xb6   :  { %60 = vpush %v42_v27 }
  0xe7   :  { %s61_s0 = spop %60 }
  0xe8   :  { %s44_s1 = smul.f32 0.0625, %s61_s0 }
  0xea   :  { %46 = sst [smem:[#allocation2]] %s44_s1 }
  0xeb   :  { %54 = dma.smem_to_hbm %s77_s13, 16, %s104_s2, [#allocation3]  }
  0xec   :  { %75 = dma.done.wait [#allocation3], 16  }
  0xed   :  { %76 = vsyncadd [#allocation3], 4294967280 }
  0xee   :  { %58 = sfence }
  0xef   :  { %59 = vsyncpa [#allocation3], 1 }

</bundles_post_ra>
